<compile_context>
chip_gen: v6e
topology: v6e:2x2x1
jax: 0.10.0
libtpu: 0.0.40
codegen_flags: <defaults>
</compile_context>

<pallas_src>
import functools

import jax
import jax.numpy as jnp
from jax.experimental import pallas as pl
from jax.experimental.pallas import tpu as pltpu


def _round_up(x: int, m: int) -> int:
    return ((x + m - 1) // m) * m


def _linear_kernel(x_ref, w_ref, b_ref, o_ref):
    # x_ref: (tb, C)  activations tile
    # w_ref: (C, N)   weight, pre-transposed once in the wrapper
    # b_ref: (1, N)   bias
    # o_ref: (tb, N)  un-padded output tile
    acc = jnp.dot(x_ref[...], w_ref[...], preferred_element_type=jnp.float32)
    o_ref[...] = (acc + b_ref[...]).astype(o_ref.dtype)


@functools.partial(jax.jit, static_argnames=("block_b",))
def linear_classifier_pallas(x, w, b, *, block_b: int = 2048):
    """Pallas path. x: (B, C) f32, w: (N, C) f32 (PyTorch layout), b: (N,) f32 -> (B, N)."""
    B, C = x.shape
    N = w.shape[0]

    # Batch tiling:
    #   * B > block_b         -> block_b-row tiles (multiple of 8), ragged last tile masked.
    #   * 1024 <= B <= block_b -> split into 2 tiles so a v7x megacore gets >=2 grid steps.
    #   * small B             -> single full-batch tile (block == full dim is always legal).
    if B > block_b:
        tb = block_b
    elif B >= 1024:
        tb = _round_up((B + 1) // 2, 8)
    else:
        tb = B

    grid = (pl.cdiv(B, tb),)

    # One-time tiny transpose inside the jitted graph: (N, C) -> (C, N).
    w_t = w.T
    bias = b.reshape(1, N)

    # TODO(synk): optionally stream x / w as bfloat16 (f32 accumulate) for ~2x
    # less HBM read traffic when numerics permit.
    return pl.pallas_call(
        _linear_kernel,
        out_shape=jax.ShapeDtypeStruct((B, N), x.dtype),
        grid_spec=pltpu.PrefetchScalarGridSpec(
            num_scalar_prefetch=0,
            grid=grid,
            in_specs=[
                pl.BlockSpec((tb, C), lambda i: (i, 0)),   # x: tiled on batch
                pl.BlockSpec((C, N), lambda i: (0, 0)),    # W^T: VMEM-resident
                pl.BlockSpec((1, N), lambda i: (0, 0)),    # bias: VMEM-resident
            ],
            out_specs=pl.BlockSpec((tb, N), lambda i: (i, 0)),
        ),
        compiler_params=pltpu.CompilerParams(
            dimension_semantics=("parallel",),
        ),
    )(x, w_t, bias)


_PALLAS_MIN_BATCH = 1024


def net_forward(x, w, b):
    """Forward of the PyTorch `net` module.

    Tiny batches: fused XLA op (beats any custom-kernel launch overhead).
    Large batches: bandwidth-bound -> Pallas kernel.
    """
    if x.shape[0] < _PALLAS_MIN_BATCH:
        return x @ w.T + b
    return linear_classifier_pallas(x, w, b)


if __name__ == "__main__":
    # Small shapes implied by the module: channel=32 features, numclass=10.
    batch, channel, numclass = 8, 32, 10

    key = jax.random.PRNGKey(0)
    kx, kw, kb = jax.random.split(key, 3)

    # Deterministic init mirroring nn.Linear default: U(-1/sqrt(C), 1/sqrt(C)).
    bound = 1.0 / (channel ** 0.5)
    w = jax.random.uniform(kw, (numclass, channel), dtype=jnp.float32,
                           minval=-bound, maxval=bound)
    b = jax.random.uniform(kb, (numclass,), dtype=jnp.float32,
                           minval=-bound, maxval=bound)

    # --- Test 1: small batch, Pallas path exercised explicitly (single tile).
    x_small = jax.random.normal(kx, (batch, channel), dtype=jnp.float32)
    out_small = jax.block_until_ready(linear_classifier_pallas(x_small, w, b))
    ref_small = x_small @ w.T + b
    assert out_small.shape == (batch, numclass)
    assert jnp.allclose(out_small, ref_small, atol=1e-5, rtol=1e-5)

    # --- Test 2: multi-tile grid with a ragged last tile (masked OOB writes).
    x_big = jax.random.normal(kx, (600, channel), dtype=jnp.float32)
    out_big = jax.block_until_ready(
        linear_classifier_pallas(x_big, w, b, block_b=256))   # grid = 3, last tile ragged
    ref_big = x_big @ w.T + b
    assert out_big.shape == (600, numclass)
    assert jnp.allclose(out_big, ref_big, atol=1e-5, rtol=1e-5)

    # --- Test 3: module-equivalent dispatcher (XLA path at tiny batch).
    out_disp = jax.block_until_ready(net_forward(x_small, w, b))
    assert jnp.allclose(out_disp, ref_small, atol=1e-5, rtol=1e-5)

    print("KERNEL_OK")
</pallas_src>

<mosaic_0001>
module attributes {stable_mosaic.version = 11 : i64} {
  func.func @_linear_kernel(%arg0: i32, %arg1: memref<8x32xf32, #tpu.memory_space<vmem>>, %arg2: memref<32x10xf32, #tpu.memory_space<vmem>>, %arg3: memref<1x10xf32, #tpu.memory_space<vmem>>, %arg4: memref<8x10xf32, #tpu.memory_space<vmem>>) attributes {dimension_semantics = [#tpu.dimension_semantics<parallel>], iteration_bounds = array<i64: 1>, scalar_prefetch = 0 : i64, scratch_operands = 0 : i64, tpu.core_type = #tpu.core_type<tc>, window_params = [{transform_indices = @transform_0, window_bounds = array<i64: 8, 32>}, {pipeline_mode = #tpu.pipeline_mode<synchronous>, transform_indices = @transform_1, window_bounds = array<i64: 32, 10>}, {pipeline_mode = #tpu.pipeline_mode<synchronous>, transform_indices = @transform_2, window_bounds = array<i64: 1, 10>}, {transform_indices = @transform_3, window_bounds = array<i64: 8, 10>}]} {
    %c0 = arith.constant 0 : index
    %c0_0 = arith.constant 0 : index
    %0 = vector.load %arg1[%c0, %c0_0] : memref<8x32xf32, #tpu.memory_space<vmem>>, vector<8x32xf32>
    %c0_1 = arith.constant 0 : index
    %c0_2 = arith.constant 0 : index
    %1 = vector.load %arg2[%c0_1, %c0_2] : memref<32x10xf32, #tpu.memory_space<vmem>>, vector<32x10xf32>
    %cst = arith.constant dense<0.000000e+00> : vector<8x10xf32>
    %2 = tpu.matmul %0, %1, %cst {dimension_numbers = #tpu.dot_dimension_numbers<[1], [0], [0], [1], [0, 0, 1, 1], [], []>} : vector<8x32xf32>, vector<32x10xf32>, vector<8x10xf32> -> vector<8x10xf32>
    %c0_3 = arith.constant 0 : index
    %c0_4 = arith.constant 0 : index
    %3 = vector.load %arg3[%c0_3, %c0_4] : memref<1x10xf32, #tpu.memory_space<vmem>>, vector<1x10xf32>
    %4 = vector.broadcast %3 : vector<1x10xf32> to vector<8x10xf32>
    %5 = arith.addf %2, %4 : vector<8x10xf32>
    %c0_5 = arith.constant 0 : index
    %c0_6 = arith.constant 0 : index
    %6 = vector.load %arg4[%c0_5, %c0_6] : memref<8x10xf32, #tpu.memory_space<vmem>>, vector<8x10xf32>
    tpu.vector_store %arg4[%c0_5, %c0_6], %5 {strides = array<i32>} : memref<8x10xf32, #tpu.memory_space<vmem>>, vector<8x10xf32>,
    return
  }
  func.func @transform_0(%arg0: i32) -> (i32, i32) {
    %c0_i32 = arith.constant 0 : i32
    %c0_i32_0 = arith.constant 0 : i32
    return %arg0, %c0_i32 : i32, i32
  }
  func.func @transform_1(%arg0: i32) -> (i32, i32) {
    %c0_i32 = arith.constant 0 : i32
    %c0_i32_0 = arith.constant 0 : i32
    %c0_i32_1 = arith.constant 0 : i32
    return %c0_i32, %c0_i32_0 : i32, i32
  }
  func.func @transform_2(%arg0: i32) -> (i32, i32) {
    %c0_i32 = arith.constant 0 : i32
    %c0_i32_0 = arith.constant 0 : i32
    %c0_i32_1 = arith.constant 0 : i32
    return %c0_i32, %c0_i32_0 : i32, i32
  }
  func.func @transform_3(%arg0: i32) -> (i32, i32) {
    %c0_i32 = arith.constant 0 : i32
    %c0_i32_0 = arith.constant 0 : i32
    return %arg0, %c0_i32 : i32, i32
  }
}

</mosaic_0001>

<bundles_post_ra>
// kernel: linear_classifier_pallas.1
= control target key start
LH: loop header
LB: loop body
LE: loop exit
PB: predicated region body
PF: predicated region fallthrough
CT: control target
= control target key end

     0   :  { %v160_v1 = vmov 0.0   ;;  %vm161_vm0 = vmmov 0   ;;  %s204_s0 = inlined_call_operand.vmem [shape: f32[8,32], index: 0, kind: input, shape index: {}]   ;;  %s205_s1 = inlined_call_operand.vmem [shape: f32[32,10], index: 1, kind: input, shape index: {}]   ;;  %s206_s2 = inlined_call_operand.vmem [shape: f32[1,10], index: 2, kind: input, shape index: {}]   ;;  %s207_s3 = inlined_call_operand.hbm [shape: f32[8,10], index: 3, kind: output, shape index: {}]  }
   0x1   :  { %v19_v0 = vld [vmem:[%s205_s1 + $0x18] sm:$0xff]  ;;  %124 = vmatprep.subr.mxu0 %v160_v1  ;;  %v18_v2 = vld [vmem:[%s205_s1 + $0x10] sm:$0xff]  ;;  %132 = vmatprep.mubr.msk.f32.mxu0 %vm161_vm0, %v160_v1 }
   0x2   :  { %125 = vmatpush3.msra.mxu0 %v19_v0 }
   0x3   :  { %8 = vsyncpa [#allocation3], 0  ;;  %126 = vmatprep.subr.mxu0 %v160_v1  ;;  %v17_v3 = vld [vmem:[%s205_s1 + $0x8] sm:$0xff]  ;;  %v16_v4 = vld [vmem:[%s205_s1] sm:$0xff]  ;;  %vm27_vm1 = vcmask 261120   ;;  %s162_s24 = smov [#allocation2]  }
   0x4   :  { %127 = vmatpush3.msra.mxu0 %v18_v2  ;;  %v15_v5 = vld [vmem:[%s204_s0] sm:$0xff]  ;;  %s109_s25 = sshll.u32 %s162_s24, 4  ;;  %vm101_vm2 = vcmask 80896   ;;  %s110_s25 = int_to_ptr.vmem [resolvable:$true] %s109_s25 }
   0x5   :  { %128 = vmatprep.subr.mxu0 %v160_v1  ;;  %v117_v6 = vld [vmem:[%s206_s2] ss:$0 sm:$0xff]  ;;  %s138_s1 = scalar_lea.vmem %s110_s25, 128  ;;  %p143_p1 = scmp.lt.s32.totalorder %s110_s25, %s110_s25 }
   0x6   :  { %129 = vmatpush3.msra.mxu0 %v17_v3  ;;  %p139_p0 = scmp.ne.s32.totalorder %s110_s25, %s138_s1  ;;  %p144_p2 = scmp.lt.s32.totalorder %s138_s1, %s138_s1 }
   0x7   :  { %130 = vmatprep.subr.mxu0 %v160_v1 }
   0x8   :  { %131 = vmatpush3.msra.mxu0 %v16_v4  ;;  %p145_p3 = por %p144_p2, %p143_p1 }
   0x9   :  { %133 = vmatmul.mubr.msk.f32.vlgmr.msra.gmra.mxu0 %vm27_vm1, %v15_v5 }
   0xa   :  { %p146_p4 = pnand %p145_p3, %p139_p0 }
  0xc9   :  { %v97_v7 = vpop.f32.mrf.mxu0 }
  0xca   :  { %v98_v8 = vadd.f32 %v117_v6, %v97_v7 }
  0xcb   :  { %v134_v9 = vpop.f32.mrf.mxu0 }
  0xcc   :  { %102 = vst.msk [vmem:[#allocation2] sm:$0xff] %vm101_vm2, %v98_v8 }
  0xcd   :  { %149 = shalt.err (!%p146_p4)
}
  0xce   :  { %112 = dma.vmem_to_hbm [thread:$0]  %s110_s25, 128, %s207_s3, [#allocation3]  }
  0xcf   :  { %158 = dma.done.wait [#allocation3], 128  }
  0xd0   :  { %159 = vsyncadd [#allocation3], 4294967168 }
  0xd1   :  { %116 = vsyncpa [#allocation3], 1 }

</bundles_post_ra>
